<compile_context>
chip_gen: v6e
topology: v6e:2x2x1
jax: 0.10.0
libtpu: 0.0.40
codegen_flags: <defaults>
</compile_context>

<pallas_src>
import functools

import numpy as np

import jax
import jax.numpy as jnp
from jax import lax
from jax.experimental import pallas as pl
from jax.experimental.pallas import tpu as pltpu


CLIP_MEAN = jnp.array([0.48145466, 0.4578275, 0.40821073], dtype=jnp.float32)
CLIP_STD = jnp.array([0.26862954, 0.26130258, 0.27577711], dtype=jnp.float32)

IMG_SIZE = 224                       # transforms.Resize((224, 224))
PATCH = 32                           # synthetic ViT patch size
GRID = IMG_SIZE // PATCH             # 7x7 patch grid
P = GRID * GRID                      # 49 patches
PD = 3 * PATCH * PATCH               # 3072 patch dim (channel-major in patch)
D = 64                               # synthetic CLIP embedding width

MAX_BT = 512                         # batch-tile cap (review: raise 256 -> 512)


def _round_up(x, m):
    return ((x + m - 1) // m) * m


def _choose_bt(batch):
    """Rows per grid step.

    Multiple of 8 (sublane), capped at MAX_BT; for non-tiny batches aim for an
    even step count >= 2 so v7x's two TensorCores split the "parallel" grid
    axis evenly (no-op on v5e/v6e).
    """
    b8 = _round_up(batch, 8)
    if b8 <= 16:
        # Tiny batch: single-step grid.  (A plain XLA dot+softmax would also be
        # fine here — kept on the Pallas path for a single code path.)
        return b8
    steps = max(2, -(-b8 // MAX_BT))        # at least 2 steps, tiles <= MAX_BT
    steps += steps % 2                      # even step count for v7x's 2 TCs
    bt = _round_up(-(-b8 // steps), 8)
    return max(8, min(MAX_BT, bt))


def _clip_score_kernel(pooled_ref, w_ref, bias_ref, text_dT_ref, probs_ref):
    """One grid step == BT images of the (padded) batch.

    pooled_ref:  (BT, PD) bf16  per-image mean over the 49 raw patches
    w_ref:       (PD, D)  bf16  (w1/std) @ w2  (channel-norm scale folded in)
    bias_ref:    (1, D)   f32   -(mean/std) @ w1 @ w2 (channel-norm offset)
    text_dT_ref: (D, T)   f32   pre-L2-normalized, pre-scaled-by-100, transposed
    probs_ref:   (BT, T)  f32   softmax(100 * cos-sim) rows for these images
    """
    # --- synthetic encode_image (fused patch-embed + pool + projection) -----
    feat = jnp.dot(pooled_ref[...], w_ref[...],
                   preferred_element_type=jnp.float32)                  # (BT, D)
    feat = feat + bias_ref[...]

    # --- L2 normalize image features (norm over last axis, keepdim) ---------
    feat_n = feat * lax.rsqrt(jnp.sum(feat * feat, axis=-1, keepdims=True))

    # --- similarity logits; text already L2-normalized, scaled by 100 and
    # --- pre-transposed to (D, T), so this is a plain NN matmul (no XLU work).
    logits = jnp.dot(feat_n, text_dT_ref[...],
                     preferred_element_type=jnp.float32)                # (BT, T)

    # --- softmax over text dim (exact divide: row sums must be ~1) ----------
    m = jnp.max(logits, axis=-1, keepdims=True)
    e = jnp.exp(logits - m)
    probs_ref[...] = e / jnp.sum(e, axis=-1, keepdims=True)


def _fold_weights(w1, w2):
    """Fold projection and CLIP channel normalization into a single affine map."""
    std_vec = jnp.repeat(CLIP_STD, PATCH * PATCH)          # (PD,), channel-major
    mean_vec = jnp.repeat(CLIP_MEAN, PATCH * PATCH)        # (PD,)
    w = jnp.dot(w1, w2)                                    # (PD, D)
    w_eff = w / std_vec[:, None]                           # scale rows by 1/std
    bias = -jnp.dot(mean_vec / std_vec, w)                 # (D,)
    return w_eff.astype(jnp.bfloat16), bias.reshape(1, D).astype(jnp.float32)


def preprocess(x):
    """x: (B, 3, H, W) in [0,1] -> pooled raw patches (B, PD) in bf16.

    Pooling is a reshape + mean over the 7x7 patch-grid axes (no 6-D transpose,
    no (B, 49, 3072) materialization); the resize output stays bf16 to halve
    the dominant HBM traffic of the glue, mean accumulates in f32.
    """
    B = x.shape[0]
    # transforms.Resize((224, 224)) -> bilinear resize per image.
    # TODO(synk): torchvision antialiased resize is not reproduced; plain bilinear.
    xr = jax.image.resize(x.astype(jnp.bfloat16),
                          (B, 3, IMG_SIZE, IMG_SIZE), method="bilinear")
    # mean over the patch-grid axes == mean over the 49 patches, channel-major
    # (C, 32, 32) layout within the pooled patch — identical ordering to a
    # flattened conv patch-embedding input.
    pooled = xr.reshape(B, 3, GRID, PATCH, GRID, PATCH).mean(
        axis=(2, 4), dtype=jnp.float32)                    # (B, 3, 32, 32)
    return pooled.reshape(B, PD).astype(jnp.bfloat16)


def clip_probs_pallas(pooled, w_eff, bias, text_dT, *, bt):
    """pooled: (B_pad, PD) bf16, text_dT: (D, T) f32 -> probs (B_pad, T) f32."""
    B_pad = pooled.shape[0]
    T = text_dT.shape[1]
    return pl.pallas_call(
        _clip_score_kernel,
        out_shape=jax.ShapeDtypeStruct((B_pad, T), jnp.float32),
        grid_spec=pltpu.PrefetchScalarGridSpec(
            num_scalar_prefetch=0,
            grid=(B_pad // bt,),
            in_specs=[
                pl.BlockSpec((bt, PD), lambda b: (b, 0)),
                pl.BlockSpec((PD, D), lambda b: (0, 0)),
                pl.BlockSpec((1, D), lambda b: (0, 0)),
                pl.BlockSpec((D, T), lambda b: (0, 0)),
            ],
            out_specs=pl.BlockSpec((bt, T), lambda b: (b, 0)),
        ),
        compiler_params=pltpu.CompilerParams(
            dimension_semantics=("parallel",),
            # bt=512 footprint ~7 MiB (pooled 3 MiB x2 + W 0.4 MiB x2 + small);
            # explicit limit keeps headroom on v5e's 16 MiB scoped default.
            vmem_limit_bytes=32 * 1024 * 1024),
    )(pooled, w_eff, bias, text_dT)


@functools.partial(jax.jit, static_argnames=("bt",))
def _forward_jit(x, text_features, w1, w2, *, bt):
    pooled = preprocess(x)                                  # (B, PD) bf16
    w_eff, bias = _fold_weights(w1, w2)
    # L2-normalize text features once (loop-invariant), fold in the 100x scale,
    # and pre-transpose to (D, T) so the kernel's similarity matmul is NN.
    text_scaled = 100.0 * text_features * lax.rsqrt(
        jnp.sum(text_features * text_features, axis=-1, keepdims=True))
    text_dT = text_scaled.T.astype(jnp.float32)             # (D, T)

    B = pooled.shape[0]
    B_pad = _round_up(B, bt)
    if B_pad != B:
        pooled = jnp.pad(pooled, ((0, B_pad - B), (0, 0)), mode="edge")

    probs = clip_probs_pallas(pooled, w_eff, bias, text_dT, bt=bt)
    return probs[:B]


def l_clip_from_feature_forward(x, text_features, w1, w2):
    """Mirrors L_clip_from_feature.forward: returns (score, rate)."""
    B = x.shape[0]
    bt = _choose_bt(B)
    probs = _forward_jit(x, text_features, w1, w2, bt=bt)   # (B, T)
    # score = mean over batch of similarity[0][0]
    score = jnp.mean(probs[:, 0])
    rate = {i: np.asarray(probs[i]) for i in range(B)}
    return score, rate


if __name__ == "__main__":
    key = jax.random.PRNGKey(0)
    kx, kt, k1, k2 = jax.random.split(key, 4)

    # small, module-consistent shapes
    B, H, W = 2, 16, 16          # images are resized to 224x224 inside forward
    T = 8                        # number of text prompts

    x = jax.random.uniform(kx, (B, 3, H, W), dtype=jnp.float32)
    text_features = jax.random.normal(kt, (T, D), dtype=jnp.float32)

    # deterministic synthetic CLIP image-encoder weights
    w1 = jax.random.normal(k1, (PD, D), dtype=jnp.float32) / jnp.sqrt(PD)
    w2 = jax.random.normal(k2, (D, D), dtype=jnp.float32) / jnp.sqrt(D)

    score, rate = l_clip_from_feature_forward(x, text_features, w1, w2)
    jax.block_until_ready(score)

    assert score.shape == ()
    assert len(rate) == B and rate[0].shape == (T,)
    # probability rows must sum to ~1 (exact softmax divide in the kernel)
    assert all(abs(float(rate[i].sum()) - 1.0) < 1e-3 for i in range(B))
    print("KERNEL_OK")
</pallas_src>

<mosaic_0001>
module attributes {stable_mosaic.version = 11 : i64} {
  func.func @_clip_score_kernel(%arg0: i32, %arg1: memref<8x3072xbf16, #tpu.memory_space<vmem>>, %arg2: memref<3072x64xbf16, #tpu.memory_space<vmem>>, %arg3: memref<1x64xf32, #tpu.memory_space<vmem>>, %arg4: memref<64x8xf32, #tpu.memory_space<vmem>>, %arg5: memref<8x8xf32, #tpu.memory_space<vmem>>) attributes {dimension_semantics = [#tpu.dimension_semantics<parallel>], iteration_bounds = array<i64: 1>, scalar_prefetch = 0 : i64, scratch_operands = 0 : i64, tpu.core_type = #tpu.core_type<tc>, window_params = [{transform_indices = @transform_0, window_bounds = array<i64: 8, 3072>}, {pipeline_mode = #tpu.pipeline_mode<synchronous>, transform_indices = @transform_1, window_bounds = array<i64: 3072, 64>}, {pipeline_mode = #tpu.pipeline_mode<synchronous>, transform_indices = @transform_2, window_bounds = array<i64: 1, 64>}, {pipeline_mode = #tpu.pipeline_mode<synchronous>, transform_indices = @transform_3, window_bounds = array<i64: 64, 8>}, {transform_indices = @transform_4, window_bounds = array<i64: 8, 8>}]} {
    %c0 = arith.constant 0 : index
    %c0_0 = arith.constant 0 : index
    %0 = vector.load %arg1[%c0, %c0_0] : memref<8x3072xbf16, #tpu.memory_space<vmem>>, vector<8x3072xbf16>
    %c0_1 = arith.constant 0 : index
    %c0_2 = arith.constant 0 : index
    %1 = vector.load %arg2[%c0_1, %c0_2] : memref<3072x64xbf16, #tpu.memory_space<vmem>>, vector<3072x64xbf16>
    %cst = arith.constant dense<0.000000e+00> : vector<8x64xf32>
    %2 = tpu.matmul %0, %1, %cst {dimension_numbers = #tpu.dot_dimension_numbers<[1], [0], [0], [1], [0, 0, 1, 1], [], []>} : vector<8x3072xbf16>, vector<3072x64xbf16>, vector<8x64xf32> -> vector<8x64xf32>
    %c0_3 = arith.constant 0 : index
    %c0_4 = arith.constant 0 : index
    %3 = vector.load %arg3[%c0_3, %c0_4] : memref<1x64xf32, #tpu.memory_space<vmem>>, vector<1x64xf32>
    %4 = vector.broadcast %3 : vector<1x64xf32> to vector<8x64xf32>
    %5 = arith.addf %2, %4 : vector<8x64xf32>
    %6 = arith.mulf %5, %5 : vector<8x64xf32>
    %cst_5 = arith.constant dense<0.000000e+00> : vector<8xf32>
    %7 = vector.multi_reduction <add>, %6, %cst_5 [1] : vector<8x64xf32> to vector<8xf32>
    %8 = vector.shape_cast %7 : vector<8xf32> to vector<8x1xf32>
    %9 = math.rsqrt %8 : vector<8x1xf32>
    %10 = vector.broadcast %9 : vector<8x1xf32> to vector<8x64xf32>
    %11 = arith.mulf %5, %10 : vector<8x64xf32>
    %c0_6 = arith.constant 0 : index
    %c0_7 = arith.constant 0 : index
    %12 = vector.load %arg4[%c0_6, %c0_7] : memref<64x8xf32, #tpu.memory_space<vmem>>, vector<64x8xf32>
    %cst_8 = arith.constant dense<0.000000e+00> : vector<8x8xf32>
    %13 = tpu.matmul %11, %12, %cst_8 {dimension_numbers = #tpu.dot_dimension_numbers<[1], [0], [0], [1], [0, 0, 1, 1], [], []>} : vector<8x64xf32>, vector<64x8xf32>, vector<8x8xf32> -> vector<8x8xf32>
    %cst_9 = arith.constant dense<0xFF800000> : vector<8xf32>
    %14 = vector.multi_reduction <maximumf>, %13, %cst_9 [1] : vector<8x8xf32> to vector<8xf32>
    %15 = vector.shape_cast %14 : vector<8xf32> to vector<8x1xf32>
    %16 = vector.broadcast %15 : vector<8x1xf32> to vector<8x8xf32>
    %17 = arith.subf %13, %16 : vector<8x8xf32>
    %18 = math.exp %17 : vector<8x8xf32>
    %cst_10 = arith.constant dense<0.000000e+00> : vector<8xf32>
    %19 = vector.multi_reduction <add>, %18, %cst_10 [1] : vector<8x8xf32> to vector<8xf32>
    %20 = vector.shape_cast %19 : vector<8xf32> to vector<8x1xf32>
    %21 = vector.broadcast %20 : vector<8x1xf32> to vector<8x8xf32>
    %22 = arith.divf %18, %21 : vector<8x8xf32>
    %c0_11 = arith.constant 0 : index
    %c0_12 = arith.constant 0 : index
    %23 = vector.load %arg5[%c0_11, %c0_12] : memref<8x8xf32, #tpu.memory_space<vmem>>, vector<8x8xf32>
    tpu.vector_store %arg5[%c0_11, %c0_12], %22 {strides = array<i32>} : memref<8x8xf32, #tpu.memory_space<vmem>>, vector<8x8xf32>,
    return
  }
  func.func @transform_0(%arg0: i32) -> (i32, i32) {
    %c0_i32 = arith.constant 0 : i32
    %c0_i32_0 = arith.constant 0 : i32
    return %arg0, %c0_i32 : i32, i32
  }
  func.func @transform_1(%arg0: i32) -> (i32, i32) {
    %c0_i32 = arith.constant 0 : i32
    %c0_i32_0 = arith.constant 0 : i32
    %c0_i32_1 = arith.constant 0 : i32
    return %c0_i32, %c0_i32_0 : i32, i32
  }
  func.func @transform_2(%arg0: i32) -> (i32, i32) {
    %c0_i32 = arith.constant 0 : i32
    %c0_i32_0 = arith.constant 0 : i32
    %c0_i32_1 = arith.constant 0 : i32
    return %c0_i32, %c0_i32_0 : i32, i32
  }
  func.func @transform_3(%arg0: i32) -> (i32, i32) {
    %c0_i32 = arith.constant 0 : i32
    %c0_i32_0 = arith.constant 0 : i32
    %c0_i32_1 = arith.constant 0 : i32
    return %c0_i32, %c0_i32_0 : i32, i32
  }
  func.func @transform_4(%arg0: i32) -> (i32, i32) {
    %c0_i32 = arith.constant 0 : i32
    %c0_i32_0 = arith.constant 0 : i32
    return %arg0, %c0_i32 : i32, i32
  }
}

</mosaic_0001>

<bundles_post_ra>
// kernel: div.30
= control target key start
LH: loop header
LB: loop body
LE: loop exit
PB: predicated region body
PF: predicated region fallthrough
CT: control target
= control target key end

     0   :  { %s149_s0 = inlined_call_operand.vmem [shape: f32[3,1024], index: 0, kind: input, shape index: {}]   ;;  %s150_s1 = inlined_call_operand.vmem [shape: f32[3072], index: 1, kind: output, shape index: {}]  }
   0x1   :  { %v77_v0 = vld [vmem:[%s149_s0 + $0x1c] sm:$0xf]  ;;  %v78_v1 = vld [vmem:[%s149_s0 + $0x18] sm:$0xf]  ;;  %v79_v2 = vld [vmem:[%s149_s0 + $0x14] sm:$0xf] }
   0x2   :  { %9 = vst [vmem:[#allocation0 + $0x8] sm:$0xf] %v77_v0  ;;  %14 = vst [vmem:[#allocation0 + $0x38] sm:$0xf] %v78_v1  ;;  %v80_v3 = vld [vmem:[%s149_s0 + $0x10] sm:$0xf] }
   0x3   :  { %19 = vst [vmem:[#allocation0 + $0x20] sm:$0xf] %v79_v2  ;;  %v81_v4 = vld [vmem:[%s149_s0 + $0xc] sm:$0xf]  ;;  %v82_v5 = vld [vmem:[%s149_s0 + $0x8] sm:$0xf] }
   0x4   :  { %24 = vst [vmem:[#allocation0 + $0x28] sm:$0xf] %v80_v3  ;;  %29 = vst [vmem:[#allocation0 + $0x30] sm:$0xf] %v81_v4  ;;  %v83_v6 = vld [vmem:[%s149_s0 + $0x4] sm:$0xf] }
   0x5   :  { %34 = vst [vmem:[#allocation0 + $0x18] sm:$0xf] %v82_v5  ;;  %v39_v7 = vld [vmem:[%s149_s0] sm:$0xf]  ;;  %38 = vst [vmem:[#allocation0 + $0x10] sm:$0xf] %v83_v6 }
   0x6   :  { %40 = vst [vmem:[#allocation0] sm:$0xf] %v39_v7 }
   0x9   :  { %v64_v9 = vld [vmem:[#allocation0 + $0x38] sm:$0x7]   ;;  %v68_v10 = vld [vmem:[#allocation0 + $0x8] sm:$0x7]  }
   0xa   :  { %v60_v8 = vld [vmem:[#allocation0 + $0x20] sm:$0x7]   ;;  %89 = vst [vmem:[%s150_s1 + $0x6] ss:$8 sm:$0x7] %v64_v9  }
   0xb   :  { %v52_v12 = vld [vmem:[#allocation0 + $0x30] sm:$0x7]   ;;  %v56_v13 = vld [vmem:[#allocation0 + $0x28] sm:$0x7]  }
   0xc   :  { %v48_v11 = vld [vmem:[#allocation0 + $0x18] sm:$0x7]   ;;  %88 = vst [vmem:[%s150_s1 + $0x5] ss:$8 sm:$0x7] %v60_v8  }
   0xd   :  { %90 = vst [vmem:[%s150_s1 + $0x7] ss:$8 sm:$0x7] %v68_v10   ;;  %v41_v14 = vld [vmem:[#allocation0] sm:$0x7]  }
   0xe   :  { %v44_v15 = vld [vmem:[#allocation0 + $0x10] sm:$0x7]   ;;  %85 = vst [vmem:[%s150_s1 + $0x2] ss:$8 sm:$0x7] %v48_v11  }
   0xf   :  { %86 = vst [vmem:[%s150_s1 + $0x3] ss:$8 sm:$0x7] %v52_v12   ;;  %87 = vst [vmem:[%s150_s1 + $0x4] ss:$8 sm:$0x7] %v56_v13  }
  0x10   :  { %42 = vst [vmem:[%s150_s1] ss:$8 sm:$0x7] %v41_v14   ;;  %84 = vst [vmem:[%s150_s1 + $0x1] ss:$8 sm:$0x7] %v44_v15  }

// kernel: div.33
= control target key start
LH: loop header
LB: loop body
LE: loop exit
PB: predicated region body
PF: predicated region fallthrough
CT: control target
= control target key end

     0   :  { %s87_s0 = inlined_call_operand.vmem [shape: f32[3072], index: 0, kind: input, shape index: {}]   ;;  %s88_s1 = inlined_call_operand.vmem [shape: f32[3072], index: 1, kind: input, shape index: {}]   ;;  %s89_s2 = inlined_call_operand.vmem [shape: f32[3072], index: 2, kind: output, shape index: {}]  }
   0x1   :  { %v4_v0 = vld [vmem:[%s88_s1] sm:$0xff]  ;;  %v34_v1 = vld [vmem:[%s88_s1 + $0x8] sm:$0xff]  ;;  %v37_v2 = vld [vmem:[%s88_s1 + $0x10] sm:$0xff] }
   0x2   :  { %39 = vrcp.f32 %v4_v0  ;;  %v3_v3 = vld [vmem:[%s87_s0] sm:$0xff]  ;;  %v33_v4 = vld [vmem:[%s87_s0 + $0x8] sm:$0xff]  ;;  %v36_v6 = vld [vmem:[%s87_s0 + $0x10] sm:$0xff] }
   0x3   :  { %41 = vrcp.f32 %v34_v1 }
   0x4   :  { %43 = vrcp.f32 %v37_v2 }
   0xf   :  { %v40_v5 = vpop.eup %39 }
  0x10   :  { %v42_v7 = vpop.eup %41  ;;  %v8_v8 = vmul.f32 %v40_v5, %v3_v3 }
  0x11   :  { %v44_v9 = vpop.eup %43  ;;  %v18_v10 = vmul.f32 %v42_v7, %v33_v4 }
  0x12   :  { %10 = vst [vmem:[%s89_s2] sm:$0xff] %v8_v8  ;;  %v29_v11 = vmul.f32 %v44_v9, %v36_v6 }
  0x13   :  { %35 = vst [vmem:[%s89_s2 + $0x8] sm:$0xff] %v18_v10 }
  0x14   :  { %38 = vst [vmem:[%s89_s2 + $0x10] sm:$0xff] %v29_v11 }

// kernel: _forward_jit.1
= control target key start
LH: loop header
LB: loop body
LE: loop exit
PB: predicated region body
PF: predicated region fallthrough
CT: control target
= control target key end

     0   :  { %vm2138_vm0 = vcmask 523264   ;;  %vm2977_vm1 = vmmov 0   ;;  %vm2225_vm2 = vcmask 64512   ;;  %s3650_s1 = inlined_call_operand.vmem [shape: bf16[3072,64], index: 1, kind: input, shape index: {}]   ;;  %s3651_s0 = inlined_call_operand.vmem [shape: bf16[8,3072], index: 0, kind: input, shape index: {}]   ;;  %s3652_s2 = inlined_call_operand.vmem [shape: f32[1,64], index: 2, kind: input, shape index: {}]   ;;  %s3653_s3 = inlined_call_operand.vmem [shape: f32[64,8], index: 3, kind: input, shape index: {}]   ;;  %s3654_s4 = inlined_call_operand.vmem [shape: f32[8,8], index: 4, kind: output, shape index: {}]  }
   0x1   :  { %v2754_v0 = vld [vmem:[%s3650_s1 + $0x78] sm:$0xff]   ;;  %v2758_v4 = vld [vmem:[%s3650_s1 + $0x70] sm:$0xff]   ;;  %v2762_v8 = vld [vmem:[%s3650_s1 + $0x68] sm:$0xff]  }
   0x2   :  { %v2755_v1 = vld [vmem:[%s3650_s1 + $0xf8] sm:$0xff]   ;;  %2460 = vmatprep.subr.bf16.mxu0 %v2754_v0  ;;  %v2759_v5 = vld [vmem:[%s3650_s1 + $0xf0] sm:$0xff]   ;;  %v2763_v9 = vld [vmem:[%s3650_s1 + $0xe8] sm:$0xff]  }
   0x3   :  { %v2756_v2 = vld [vmem:[%s3650_s1 + $0x38] sm:$0xff]   ;;  %2482 = vmatprep.subr.bf16.mxu1 %v2755_v1  ;;  %v2760_v6 = vld [vmem:[%s3650_s1 + $0x30] sm:$0xff]   ;;  %v2764_v10 = vld [vmem:[%s3650_s1 + $0x28] sm:$0xff]  }
   0x4   :  { %v2757_v3 = vld [vmem:[%s3650_s1 + $0xb8] sm:$0xff]   ;;  %2461 = vmatpush3.bf16.msra.mxu0 %v2756_v2  ;;  %v2761_v7 = vld [vmem:[%s3650_s1 + $0xb0] sm:$0xff]   ;;  %v2765_v11 = vld [vmem:[%s3650_s1 + $0xa8] sm:$0xff]  }
   0x5   :  { %2483 = vmatpush3.bf16.msra.mxu1 %v2757_v3  ;;  %2462 = vmatprep.subr.bf16.mxu0 %v2758_v4  ;;  %v2766_v12 = vld [vmem:[%s3650_s1 + $0x60] sm:$0xff]   ;;  %v2770_v16 = vld [vmem:[%s3650_s1 + $0x58] sm:$0xff]   ;;  %v2774_v20 = vld [vmem:[%s3650_s1 + $0x50] sm:$0xff]  }
   0x6   :  { %2484 = vmatprep.subr.bf16.mxu1 %v2759_v5  ;;  %v2767_v13 = vld [vmem:[%s3650_s1 + $0xe0] sm:$0xff]   ;;  %v2771_v17 = vld [vmem:[%s3650_s1 + $0xd8] sm:$0xff]   ;;  %v2775_v21 = vld [vmem:[%s3650_s1 + $0xd0] sm:$0xff]  }
   0x7   :  { %v2768_v14 = vld [vmem:[%s3650_s1 + $0x20] sm:$0xff]   ;;  %v2772_v18 = vld [vmem:[%s3650_s1 + $0x18] sm:$0xff]   ;;  %v2776_v22 = vld [vmem:[%s3650_s1 + $0x10] sm:$0xff]  }
   0x8   :  { %2463 = vmatpush3.bf16.msra.mxu0 %v2760_v6  ;;  %v2769_v15 = vld [vmem:[%s3650_s1 + $0xa0] sm:$0xff]   ;;  %v2773_v19 = vld [vmem:[%s3650_s1 + $0x98] sm:$0xff]   ;;  %v2777_v23 = vld [vmem:[%s3650_s1 + $0x90] sm:$0xff]  }
   0x9   :  { %2485 = vmatpush3.bf16.msra.mxu1 %v2761_v7  ;;  %2464 = vmatprep.subr.bf16.mxu0 %v2762_v8  ;;  %v2778_v24 = vld [vmem:[%s3650_s1 + $0x48] sm:$0xff]   ;;  %v2782_v28 = vld [vmem:[%s3650_s1 + $0x40] sm:$0xff]   ;;  %v2790_v38 = vld [vmem:[%s3650_s1 + $0x178] sm:$0xff]  }
   0xa   :  { %2486 = vmatprep.subr.bf16.mxu1 %v2763_v9  ;;  %v2779_v25 = vld [vmem:[%s3650_s1 + $0xc8] sm:$0xff]   ;;  %v2783_v29 = vld [vmem:[%s3650_s1 + $0xc0] sm:$0xff]   ;;  %v2791_v39 = vld [vmem:[%s3650_s1 + $0x1f8] sm:$0xff]  }
   0xb   :  { %v2780_v26 = vld [vmem:[%s3650_s1 + $0x8] sm:$0xff]   ;;  %v2784_v30 = vld [vmem:[%s3650_s1] sm:$0xff]   ;;  %v2792_v40 = vld [vmem:[%s3650_s1 + $0x138] sm:$0xff]  }
   0xc   :  { %2465 = vmatpush3.bf16.msra.mxu0 %v2764_v10  ;;  %v2781_v27 = vld [vmem:[%s3650_s1 + $0x88] sm:$0xff]   ;;  %v2785_v31 = vld [vmem:[%s3650_s1 + $0x80] sm:$0xff]   ;;  %v2793_v41 = vld [vmem:[%s3650_s1 + $0x1b8] sm:$0xff]  }
   0xd   :  { %2487 = vmatpush3.bf16.msra.mxu1 %v2765_v11  ;;  %2466 = vmatprep.subr.bf16.mxu0 %v2766_v12  ;;  %v18_v32 = vld [vmem:[%s3651_s0] sm:$0xff]  ;;  %v19_v33 = vld [vmem:[%s3651_s0 + $0x8] sm:$0xff]  ;;  %v2794_v42 = vld [vmem:[%s3650_s1 + $0x170] sm:$0xff]  }
   0xe   :  { %2488 = vmatprep.subr.bf16.mxu1 %v2767_v13  ;;  %v2243_v34 = vcombine.low %v18_v32, %v18_v32  ;;  %v2244_v35 = vcombine.high %v18_v32, %v18_v32  ;;  %v2245_v36 = vcombine.low %v19_v33, %v19_v33  ;;  %v2246_v37 = vcombine.high %v19_v33, %v19_v33  ;;  %v2795_v43 = vld [vmem:[%s3650_s1 + $0x1f0] sm:$0xff]   ;;  %v2798_v46 = vld [vmem:[%s3650_s1 + $0x168] sm:$0xff]   ;;  %v2802_v50 = vld [vmem:[%s3650_s1 + $0x160] sm:$0xff]  }
   0xf   :  { %v2796_v44 = vld [vmem:[%s3650_s1 + $0x130] sm:$0xff]   ;;  %v2799_v47 = vld [vmem:[%s3650_s1 + $0x1e8] sm:$0xff]   ;;  %v2803_v51 = vld [vmem:[%s3650_s1 + $0x1e0] sm:$0xff]  }
  0x10   :  { %2467 = vmatpush3.bf16.msra.mxu0 %v2768_v14  ;;  %1689 = vmatprep.mubr.bf16.mxu0 %v2244_v35  ;;  %v2797_v45 = vld [vmem:[%s3650_s1 + $0x1b0] sm:$0xff]   ;;  %v2800_v48 = vld [vmem:[%s3650_s1 + $0x128] sm:$0xff]   ;;  %v2804_v52 = vld [vmem:[%s3650_s1 + $0x120] sm:$0xff]  }
  0x11   :  { %2489 = vmatpush3.bf16.msra.mxu1 %v2769_v15  ;;  %2468 = vmatprep.subr.bf16.mxu0 %v2770_v16  ;;  %v2801_v49 = vld [vmem:[%s3650_s1 + $0x1a8] sm:$0xff]   ;;  %v2805_v53 = vld [vmem:[%s3650_s1 + $0x1a0] sm:$0xff]   ;;  %v2806_v54 = vld [vmem:[%s3650_s1 + $0x158] sm:$0xff]  }
  0x12   :  { %2490 = vmatprep.subr.bf16.mxu1 %v2771_v17  ;;  %1729 = vmatprep.mubr.bf16.mxu1 %v2246_v37  ;;  %v2807_v55 = vld [vmem:[%s3650_s1 + $0x1d8] sm:$0xff]   ;;  %v2810_v58 = vld [vmem:[%s3650_s1 + $0x150] sm:$0xff]   ;;  %v2814_v62 = vld [vmem:[%s3650_s1 + $0x148] sm:$0xff]  }
  0x13   :  { %v2808_v56 = vld [vmem:[%s3650_s1 + $0x118] sm:$0xff]   ;;  %v2811_v59 = vld [vmem:[%s3650_s1 + $0x1d0] sm:$0xff]   ;;  %v2815_v63 = vld [vmem:[%s3650_s1 + $0x1c8] sm:$0xff]  }
  0x14   :  { %2469 = vmatpush3.bf16.msra.mxu0 %v2772_v18  ;;  %v2809_v57 = vld [vmem:[%s3650_s1 + $0x198] sm:$0xff]   ;;  %v2812_v60 = vld [vmem:[%s3650_s1 + $0x110] sm:$0xff]   ;;  %v2816_v0 = vld [vmem:[%s3650_s1 + $0x108] sm:$0xff]  }
  0x15   :  { %2491 = vmatpush3.bf16.msra.mxu1 %v2773_v19  ;;  %2470 = vmatprep.subr.bf16.mxu0 %v2774_v20  ;;  %v2813_v61 = vld [vmem:[%s3650_s1 + $0x190] sm:$0xff]   ;;  %v2817_v1 = vld [vmem:[%s3650_s1 + $0x188] sm:$0xff]   ;;  %v2818_v2 = vld [vmem:[%s3650_s1 + $0x140] sm:$0xff]  }
  0x16   :  { %2492 = vmatprep.subr.bf16.mxu1 %v2775_v21  ;;  %v2819_v3 = vld [vmem:[%s3650_s1 + $0x1c0] sm:$0xff]   ;;  %v20_v6 = vld [vmem:[%s3651_s0 + $0x10] sm:$0xff]  ;;  %v21_v9 = vld [vmem:[%s3651_s0 + $0x18] sm:$0xff] }
  0x17   :  { %v2820_v4 = vld [vmem:[%s3650_s1 + $0x100] sm:$0xff]   ;;  %v2247_v7 = vcombine.low %v20_v6, %v20_v6  ;;  %v2248_v8 = vcombine.high %v20_v6, %v20_v6  ;;  %v2249_v10 = vcombine.low %v21_v9, %v21_v9  ;;  %v2250_v11 = vcombine.high %v21_v9, %v21_v9  ;;  %v2826_v12 = vld [vmem:[%s3650_s1 + $0x278] sm:$0xff]   ;;  %v2830_v16 = vld [vmem:[%s3650_s1 + $0x270] sm:$0xff]  }
  0x18   :  { %2471 = vmatpush3.bf16.msra.mxu0 %v2776_v22  ;;  %v2821_v5 = vld [vmem:[%s3650_s1 + $0x180] sm:$0xff]   ;;  %v2827_v13 = vld [vmem:[%s3650_s1 + $0x2f8] sm:$0xff]   ;;  %v2831_v17 = vld [vmem:[%s3650_s1 + $0x2f0] sm:$0xff]  }
  0x19   :  { %2493 = vmatpush3.bf16.msra.mxu1 %v2777_v23  ;;  %2472 = vmatprep.subr.bf16.mxu0 %v2778_v24  ;;  %v2828_v14 = vld [vmem:[%s3650_s1 + $0x238] sm:$0xff]   ;;  %v2832_v18 = vld [vmem:[%s3650_s1 + $0x230] sm:$0xff]   ;;  %v2834_v20 = vld [vmem:[%s3650_s1 + $0x268] sm:$0xff]  }
  0x1a   :  { %2494 = vmatprep.subr.bf16.mxu1 %v2779_v25  ;;  %v2829_v15 = vld [vmem:[%s3650_s1 + $0x2b8] sm:$0xff]   ;;  %v2833_v19 = vld [vmem:[%s3650_s1 + $0x2b0] sm:$0xff]   ;;  %v2835_v21 = vld [vmem:[%s3650_s1 + $0x2e8] sm:$0xff]  }
  0x1b   :  { %v2836_v22 = vld [vmem:[%s3650_s1 + $0x228] sm:$0xff]   ;;  %v2838_v24 = vld [vmem:[%s3650_s1 + $0x260] sm:$0xff]   ;;  %v2846_v32 = vld [vmem:[%s3650_s1 + $0x250] sm:$0xff]  }
  0x1c   :  { %2473 = vmatpush3.bf16.msra.mxu0 %v2780_v26  ;;  %v2837_v23 = vld [vmem:[%s3650_s1 + $0x2a8] sm:$0xff]   ;;  %v2839_v25 = vld [vmem:[%s3650_s1 + $0x2e0] sm:$0xff]   ;;  %v2847_v33 = vld [vmem:[%s3650_s1 + $0x2d0] sm:$0xff]  }
  0x1d   :  { %2495 = vmatpush3.bf16.msra.mxu1 %v2781_v27  ;;  %2474 = vmatprep.subr.bf16.mxu0 %v2782_v28  ;;  %v2840_v26 = vld [vmem:[%s3650_s1 + $0x220] sm:$0xff]   ;;  %v2842_v28 = vld [vmem:[%s3650_s1 + $0x258] sm:$0xff]   ;;  %v2849_v35 = vld [vmem:[%s3650_s1 + $0x290] sm:$0xff]  }
  0x1e   :  { %2496 = vmatprep.subr.bf16.mxu1 %v2783_v29  ;;  %v2841_v27 = vld [vmem:[%s3650_s1 + $0x2a0] sm:$0xff]   ;;  %v2843_v29 = vld [vmem:[%s3650_s1 + $0x2d8] sm:$0xff]   ;;  %v2851_v37 = vld [vmem:[%s3650_s1 + $0x2c8] sm:$0xff]  }
  0x1f   :  { %v2882_v6 = vld [vmem:[%s3650_s1 + $0x350] sm:$0xff]  }
  0x20   :  { %2475 = vmatpush3.bf16.msra.mxu0 %v2784_v30  ;;  %v2844_v30 = vld [vmem:[%s3650_s1 + $0x218] sm:$0xff]   ;;  %v2885_v9 = vld [vmem:[%s3650_s1 + $0x390] sm:$0xff]  }
  0x21   :  { %2497 = vmatpush3.bf16.msra.mxu1 %v2785_v31  ;;  %2504 = vmatprep.subr.bf16.mxu0 %v2790_v38  ;;  %v2845_v31 = vld [vmem:[%s3650_s1 + $0x298] sm:$0xff]   ;;  %v2852_v38 = vld [vmem:[%s3650_s1 + $0x208] sm:$0xff]  }
  0x22   :  { %2526 = vmatprep.subr.bf16.mxu1 %v2791_v39  ;;  %v2853_v39 = vld [vmem:[%s3650_s1 + $0x288] sm:$0xff]  }
  0x23   :  { %1690 = vmatmul.mubr.bf16.vlgmr.msra.gmra.mxu0 %v2243_v34  ;;  %v2848_v34 = vld [vmem:[%s3650_s1 + $0x210] sm:$0xff]  }
  0x24   :  { %1730 = vmatmul.mubr.bf16.vlgmr.msra.gmra.mxu1 %v2245_v36  ;;  %2505 = vmatpush3.bf16.msra.mxu0 %v2792_v40  ;;  %v2850_v36 = vld [vmem:[%s3650_s1 + $0x248] sm:$0xff]   ;;  %v2854_v40 = vld [vmem:[%s3650_s1 + $0x240] sm:$0xff]  }
  0x25   :  { %2527 = vmatpush3.bf16.msra.mxu1 %v2793_v41  ;;  %2506 = vmatprep.subr.bf16.mxu0 %v2794_v42  ;;  %v2855_v41 = vld [vmem:[%s3650_s1 + $0x2c0] sm:$0xff]  }
  0x26   :  { %2528 = vmatprep.subr.bf16.mxu1 %v2795_v43  ;;  %1769 = vmatprep.mubr.bf16.mxu0 %v2248_v8  ;;  %v2856_v42 = vld [vmem:[%s3650_s1 + $0x200] sm:$0xff]   ;;  %v2884_v8 = vld [vmem:[%s3650_s1 + $0x310] sm:$0xff]  }
  0x27   :  { %1809 = vmatprep.mubr.bf16.mxu1 %v2250_v11  ;;  %v2857_v43 = vld [vmem:[%s3650_s1 + $0x280] sm:$0xff]   ;;  %v2887_v11 = vld [vmem:[%s3650_s1 + $0x3c8] sm:$0xff]  }
  0x28   :  { %2507 = vmatpush3.bf16.msra.mxu0 %v2796_v44  ;;  %v22_v44 = vld [vmem:[%s3651_s0 + $0x20] sm:$0xff] }
  0x29   :  { %2529 = vmatpush3.bf16.msra.mxu1 %v2797_v45  ;;  %2508 = vmatprep.subr.bf16.mxu0 %v2798_v46  ;;  %v23_v45 = vld [vmem:[%s3651_s0 + $0x28] sm:$0xff]  ;;  %v2251_v46 = vcombine.low %v22_v44, %v22_v44 }
  0x2a   :  { %2530 = vmatprep.subr.bf16.mxu1 %v2799_v47  ;;  %v2252_v47 = vcombine.high %v22_v44, %v22_v44  ;;  %v2918_v44 = vld [vmem:[%s3650_s1 + $0x450] sm:$0xff]  }
  0x2c   :  { %2509 = vmatpush3.bf16.msra.mxu0 %v2800_v48  ;;  %v2253_v48 = vcombine.low %v23_v45, %v23_v45 }
  0x2d   :  { %2531 = vmatpush3.bf16.msra.mxu1 %v2801_v49  ;;  %2510 = vmatprep.subr.bf16.mxu0 %v2802_v50  ;;  %v2254_v49 = vcombine.high %v23_v45, %v23_v45  ;;  %v2862_v50 = vld [vmem:[%s3650_s1 + $0x378] sm:$0xff]   ;;  %v2919_v45 = vld [vmem:[%s3650_s1 + $0x4d0] sm:$0xff]  }
  0x2e   :  { %2532 = vmatprep.subr.bf16.mxu1 %v2803_v51  ;;  %v2863_v51 = vld [vmem:[%s3650_s1 + $0x3f8] sm:$0xff]  }
  0x30   :  { %2511 = vmatpush3.bf16.msra.mxu0 %v2804_v52  ;;  %v2864_v52 = vld [vmem:[%s3650_s1 + $0x338] sm:$0xff]  }
  0x31   :  { %2533 = vmatpush3.bf16.msra.mxu1 %v2805_v53  ;;  %2512 = vmatprep.subr.bf16.mxu0 %v2806_v54  ;;  %v2865_v53 = vld [vmem:[%s3650_s1 + $0x3b8] sm:$0xff]   ;;  %v2866_v54 = vld [vmem:[%s3650_s1 + $0x370] sm:$0xff]  }
  0x32   :  { %2534 = vmatprep.subr.bf16.mxu1 %v2807_v55  ;;  %v2867_v55 = vld [vmem:[%s3650_s1 + $0x3f0] sm:$0xff]  }
  0x34   :  { %2513 = vmatpush3.bf16.msra.mxu0 %v2808_v56  ;;  %v2868_v56 = vld [vmem:[%s3650_s1 + $0x330] sm:$0xff]  }
  0x35   :  { %2535 = vmatpush3.bf16.msra.mxu1 %v2809_v57  ;;  %2514 = vmatprep.subr.bf16.mxu0 %v2810_v58  ;;  %v2869_v57 = vld [vmem:[%s3650_s1 + $0x3b0] sm:$0xff]   ;;  %v2870_v58 = vld [vmem:[%s3650_s1 + $0x368] sm:$0xff]  }
  0x36   :  { %2536 = vmatprep.subr.bf16.mxu1 %v2811_v59  ;;  %v2871_v59 = vld [vmem:[%s3650_s1 + $0x3e8] sm:$0xff]  }
  0x38   :  { %2515 = vmatpush3.bf16.msra.mxu0 %v2812_v60  ;;  %v2872_v60 = vld [vmem:[%s3650_s1 + $0x328] sm:$0xff]  }
  0x39   :  { %2537 = vmatpush3.bf16.msra.mxu1 %v2813_v61  ;;  %2516 = vmatprep.subr.bf16.mxu0 %v2814_v62  ;;  %v2873_v61 = vld [vmem:[%s3650_s1 + $0x3a8] sm:$0xff]   ;;  %v2874_v62 = vld [vmem:[%s3650_s1 + $0x360] sm:$0xff]  }
  0x3a   :  { %2538 = vmatprep.subr.bf16.mxu1 %v2815_v63  ;;  %v2875_v63 = vld [vmem:[%s3650_s1 + $0x3e0] sm:$0xff]  }
  0x3c   :  { %2517 = vmatpush3.bf16.msra.mxu0 %v2816_v0  ;;  %v2876_v0 = vld [vmem:[%s3650_s1 + $0x320] sm:$0xff]  }
  0x3d   :  { %2539 = vmatpush3.bf16.msra.mxu1 %v2817_v1  ;;  %2518 = vmatprep.subr.bf16.mxu0 %v2818_v2  ;;  %v2877_v1 = vld [vmem:[%s3650_s1 + $0x3a0] sm:$0xff]   ;;  %v2878_v2 = vld [vmem:[%s3650_s1 + $0x358] sm:$0xff]  }
  0x3e   :  { %2540 = vmatprep.subr.bf16.mxu1 %v2819_v3  ;;  %v2879_v3 = vld [vmem:[%s3650_s1 + $0x3d8] sm:$0xff]  }
  0x40   :  { %2519 = vmatpush3.bf16.msra.mxu0 %v2820_v4  ;;  %v2880_v4 = vld [vmem:[%s3650_s1 + $0x318] sm:$0xff]  }
  0x41   :  { %2541 = vmatpush3.bf16.msra.mxu1 %v2821_v5  ;;  %2548 = vmatprep.subr.bf16.mxu0 %v2826_v12  ;;  %v2881_v5 = vld [vmem:[%s3650_s1 + $0x398] sm:$0xff]   ;;  %v2888_v12 = vld [vmem:[%s3650_s1 + $0x308] sm:$0xff]  }
  0x42   :  { %2570 = vmatprep.subr.bf16.mxu1 %v2827_v13  ;;  %v2889_v13 = vld [vmem:[%s3650_s1 + $0x388] sm:$0xff]  }
  0x43   :  { %1770 = vmatmul.mubr.bf16.vlgmr.msra.gmra.mxu0 %v2247_v7  ;;  %v2883_v7 = vld [vmem:[%s3650_s1 + $0x3d0] sm:$0xff]  }
  0x44   :  { %1810 = vmatmul.mubr.bf16.vlgmr.msra.gmra.mxu1 %v2249_v10  ;;  %2549 = vmatpush3.bf16.msra.mxu0 %v2828_v14  ;;  %v2886_v10 = vld [vmem:[%s3650_s1 + $0x348] sm:$0xff]   ;;  %v2890_v14 = vld [vmem:[%s3650_s1 + $0x340] sm:$0xff]  }
  0x45   :  { %2571 = vmatpush3.bf16.msra.mxu1 %v2829_v15  ;;  %2550 = vmatprep.subr.bf16.mxu0 %v2830_v16  ;;  %v2891_v15 = vld [vmem:[%s3650_s1 + $0x3c0] sm:$0xff]  }
  0x46   :  { %2572 = vmatprep.subr.bf16.mxu1 %v2831_v17  ;;  %1849 = vmatprep.mubr.bf16.mxu0 %v2252_v47  ;;  %v2892_v16 = vld [vmem:[%s3650_s1 + $0x300] sm:$0xff]   ;;  %v2921_v47 = vld [vmem:[%s3650_s1 + $0x490] sm:$0xff]  }
  0x47   :  { %1889 = vmatprep.mubr.bf16.mxu1 %v2254_v49  ;;  %v2893_v17 = vld [vmem:[%s3650_s1 + $0x380] sm:$0xff]   ;;  %v2923_v49 = vld [vmem:[%s3650_s1 + $0x4c8] sm:$0xff]  }
  0x48   :  { %2551 = vmatpush3.bf16.msra.mxu0 %v2832_v18  ;;  %v24_v18 = vld [vmem:[%s3651_s0 + $0x30] sm:$0xff] }
  0x49   :  { %2573 = vmatpush3.bf16.msra.mxu1 %v2833_v19  ;;  %2552 = vmatprep.subr.bf16.mxu0 %v2834_v20  ;;  %v25_v19 = vld [vmem:[%s3651_s0 + $0x38] sm:$0xff]  ;;  %v2255_v20 = vcombine.low %v24_v18, %v24_v18 }
  0x4a   :  { %2574 = vmatprep.subr.bf16.mxu1 %v2835_v21  ;;  %v2256_v21 = vcombine.high %v24_v18, %v24_v18  ;;  %v2954_v18 = vld [vmem:[%s3650_s1 + $0x550] sm:$0xff]  }
  0x4c   :  { %2553 = vmatpush3.bf16.msra.mxu0 %v2836_v22  ;;  %v2257_v22 = vcombine.low %v25_v19, %v25_v19 }
  0x4d   :  { %2575 = vmatpush3.bf16.msra.mxu1 %v2837_v23  ;;  %2554 = vmatprep.subr.bf16.mxu0 %v2838_v24  ;;  %v2898_v23 = vld [vmem:[%s3650_s1 + $0x478] sm:$0xff]   ;;  %v2258_v24 = vcombine.high %v25_v19, %v25_v19  ;;  %v2955_v19 = vld [vmem:[%s3650_s1 + $0x5d0] sm:$0xff]  }
  0x4e   :  { %2576 = vmatprep.subr.bf16.mxu1 %v2839_v25  ;;  %v2899_v25 = vld [vmem:[%s3650_s1 + $0x4f8] sm:$0xff]  }
  0x50   :  { %2555 = vmatpush3.bf16.msra.mxu0 %v2840_v26  ;;  %v2900_v26 = vld [vmem:[%s3650_s1 + $0x438] sm:$0xff]  }
  0x51   :  { %2577 = vmatpush3.bf16.msra.mxu1 %v2841_v27  ;;  %2556 = vmatprep.subr.bf16.mxu0 %v2842_v28  ;;  %v2901_v27 = vld [vmem:[%s3650_s1 + $0x4b8] sm:$0xff]   ;;  %v2902_v28 = vld [vmem:[%s3650_s1 + $0x470] sm:$0xff]  }
  0x52   :  { %2578 = vmatprep.subr.bf16.mxu1 %v2843_v29  ;;  %v2903_v29 = vld [vmem:[%s3650_s1 + $0x4f0] sm:$0xff]  }
  0x54   :  { %2557 = vmatpush3.bf16.msra.mxu0 %v2844_v30  ;;  %v2904_v30 = vld [vmem:[%s3650_s1 + $0x430] sm:$0xff]  }
  0x55   :  { %2579 = vmatpush3.bf16.msra.mxu1 %v2845_v31  ;;  %2558 = vmatprep.subr.bf16.mxu0 %v2846_v32  ;;  %v2905_v31 = vld [vmem:[%s3650_s1 + $0x4b0] sm:$0xff]   ;;  %v2906_v32 = vld [vmem:[%s3650_s1 + $0x468] sm:$0xff]  }
  0x56   :  { %2580 = vmatprep.subr.bf16.mxu1 %v2847_v33  ;;  %v2907_v33 = vld [vmem:[%s3650_s1 + $0x4e8] sm:$0xff]  }
  0x58   :  { %2559 = vmatpush3.bf16.msra.mxu0 %v2848_v34  ;;  %v2908_v34 = vld [vmem:[%s3650_s1 + $0x428] sm:$0xff]  }
  0x59   :  { %2581 = vmatpush3.bf16.msra.mxu1 %v2849_v35  ;;  %2560 = vmatprep.subr.bf16.mxu0 %v2850_v36  ;;  %v2909_v35 = vld [vmem:[%s3650_s1 + $0x4a8] sm:$0xff]   ;;  %v2910_v36 = vld [vmem:[%s3650_s1 + $0x460] sm:$0xff]  }
  0x5a   :  { %2582 = vmatprep.subr.bf16.mxu1 %v2851_v37  ;;  %v2911_v37 = vld [vmem:[%s3650_s1 + $0x4e0] sm:$0xff]  }
  0x5c   :  { %2561 = vmatpush3.bf16.msra.mxu0 %v2852_v38  ;;  %v2912_v38 = vld [vmem:[%s3650_s1 + $0x420] sm:$0xff]  }
  0x5d   :  { %2583 = vmatpush3.bf16.msra.mxu1 %v2853_v39  ;;  %2562 = vmatprep.subr.bf16.mxu0 %v2854_v40  ;;  %v2913_v39 = vld [vmem:[%s3650_s1 + $0x4a0] sm:$0xff]   ;;  %v2914_v40 = vld [vmem:[%s3650_s1 + $0x458] sm:$0xff]  }
  0x5e   :  { %2584 = vmatprep.subr.bf16.mxu1 %v2855_v41  ;;  %v2915_v41 = vld [vmem:[%s3650_s1 + $0x4d8] sm:$0xff]  }
  0x60   :  { %2563 = vmatpush3.bf16.msra.mxu0 %v2856_v42  ;;  %v2916_v42 = vld [vmem:[%s3650_s1 + $0x418] sm:$0xff]  }
  0x61   :  { %2585 = vmatpush3.bf16.msra.mxu1 %v2857_v43  ;;  %2592 = vmatprep.subr.bf16.mxu0 %v2862_v50  ;;  %v2917_v43 = vld [vmem:[%s3650_s1 + $0x498] sm:$0xff]   ;;  %v2924_v50 = vld [vmem:[%s3650_s1 + $0x408] sm:$0xff]  }
  0x62   :  { %2614 = vmatprep.subr.bf16.mxu1 %v2863_v51  ;;  %v2925_v51 = vld [vmem:[%s3650_s1 + $0x488] sm:$0xff]  }
  0x63   :  { %1850 = vmatmul.mubr.bf16.vlgmr.msra.gmra.mxu0 %v2251_v46  ;;  %v2920_v46 = vld [vmem:[%s3650_s1 + $0x410] sm:$0xff]  }
  0x64   :  { %1890 = vmatmul.mubr.bf16.vlgmr.msra.gmra.mxu1 %v2253_v48  ;;  %2593 = vmatpush3.bf16.msra.mxu0 %v2864_v52  ;;  %v2922_v48 = vld [vmem:[%s3650_s1 + $0x448] sm:$0xff]   ;;  %v2926_v52 = vld [vmem:[%s3650_s1 + $0x440] sm:$0xff]  }
  0x65   :  { %2615 = vmatpush3.bf16.msra.mxu1 %v2865_v53  ;;  %2594 = vmatprep.subr.bf16.mxu0 %v2866_v54  ;;  %v2927_v53 = vld [vmem:[%s3650_s1 + $0x4c0] sm:$0xff]  }
  0x66   :  { %2616 = vmatprep.subr.bf16.mxu1 %v2867_v55  ;;  %1929 = vmatprep.mubr.bf16.mxu0 %v2256_v21  ;;  %v2928_v54 = vld [vmem:[%s3650_s1 + $0x400] sm:$0xff]   ;;  %v2957_v21 = vld [vmem:[%s3650_s1 + $0x590] sm:$0xff]  }
  0x67   :  { %1969 = vmatprep.mubr.bf16.mxu1 %v2258_v24  ;;  %v2929_v55 = vld [vmem:[%s3650_s1 + $0x480] sm:$0xff]   ;;  %v2960_v24 = vld [vmem:[%s3650_s1 + $0x508] sm:$0xff]  }
  0x68   :  { %2595 = vmatpush3.bf16.msra.mxu0 %v2868_v56  ;;  %v26_v56 = vld [vmem:[%s3651_s0 + $0x40] sm:$0xff] }
  0x69   :  { %2617 = vmatpush3.bf16.msra.mxu1 %v2869_v57  ;;  %2596 = vmatprep.subr.bf16.mxu0 %v2870_v58  ;;  %v2259_v57 = vcombine.low %v26_v56, %v26_v56  ;;  %v2260_v58 = vcombine.high %v26_v56, %v26_v56 }
  0x6a   :  { %2618 = vmatprep.subr.bf16.mxu1 %v2871_v59  ;;  %v27_v59 = vld [vmem:[%s3651_s0 + $0x48] sm:$0xff] }
  0x6c   :  { %2597 = vmatpush3.bf16.msra.mxu0 %v2872_v60  ;;  %v2261_v60 = vcombine.low %v27_v59, %v27_v59 }
  0x6d   :  { %2619 = vmatpush3.bf16.msra.mxu1 %v2873_v61  ;;  %2598 = vmatprep.subr.bf16.mxu0 %v2874_v62  ;;  %v2262_v61 = vcombine.high %v27_v59, %v27_v59  ;;  %v2934_v62 = vld [vmem:[%s3650_s1 + $0x578] sm:$0xff]  }
  0x6e   :  { %2620 = vmatprep.subr.bf16.mxu1 %v2875_v63  ;;  %v2935_v63 = vld [vmem:[%s3650_s1 + $0x5f8] sm:$0xff]  }
  0x70   :  { %2599 = vmatpush3.bf16.msra.mxu0 %v2876_v0  ;;  %v2936_v0 = vld [vmem:[%s3650_s1 + $0x538] sm:$0xff]  }
  0x71   :  { %2621 = vmatpush3.bf16.msra.mxu1 %v2877_v1  ;;  %2600 = vmatprep.subr.bf16.mxu0 %v2878_v2  ;;  %v2937_v1 = vld [vmem:[%s3650_s1 + $0x5b8] sm:$0xff]   ;;  %v2938_v2 = vld [vmem:[%s3650_s1 + $0x570] sm:$0xff]  }
  0x72   :  { %2622 = vmatprep.subr.bf16.mxu1 %v2879_v3  ;;  %v2939_v3 = vld [vmem:[%s3650_s1 + $0x5f0] sm:$0xff]  }
  0x74   :  { %2601 = vmatpush3.bf16.msra.mxu0 %v2880_v4  ;;  %v2940_v4 = vld [vmem:[%s3650_s1 + $0x530] sm:$0xff]  }
  0x75   :  { %2623 = vmatpush3.bf16.msra.mxu1 %v2881_v5  ;;  %2602 = vmatprep.subr.bf16.mxu0 %v2882_v6  ;;  %v2941_v5 = vld [vmem:[%s3650_s1 + $0x5b0] sm:$0xff]   ;;  %v2942_v6 = vld [vmem:[%s3650_s1 + $0x568] sm:$0xff]  }
  0x76   :  { %2624 = vmatprep.subr.bf16.mxu1 %v2883_v7  ;;  %v2943_v7 = vld [vmem:[%s3650_s1 + $0x5e8] sm:$0xff]  }
  0x78   :  { %2603 = vmatpush3.bf16.msra.mxu0 %v2884_v8  ;;  %v2944_v8 = vld [vmem:[%s3650_s1 + $0x528] sm:$0xff]  }
  0x79   :  { %2625 = vmatpush3.bf16.msra.mxu1 %v2885_v9  ;;  %2604 = vmatprep.subr.bf16.mxu0 %v2886_v10  ;;  %v2945_v9 = vld [vmem:[%s3650_s1 + $0x5a8] sm:$0xff]   ;;  %v2946_v10 = vld [vmem:[%s3650_s1 + $0x560] sm:$0xff]  }
  0x7a   :  { %2626 = vmatprep.subr.bf16.mxu1 %v2887_v11  ;;  %v2947_v11 = vld [vmem:[%s3650_s1 + $0x5e0] sm:$0xff]  }
  0x7c   :  { %2605 = vmatpush3.bf16.msra.mxu0 %v2888_v12  ;;  %v2948_v12 = vld [vmem:[%s3650_s1 + $0x520] sm:$0xff]  }
  0x7d   :  { %2627 = vmatpush3.bf16.msra.mxu1 %v2889_v13  ;;  %2606 = vmatprep.subr.bf16.mxu0 %v2890_v14  ;;  %v2949_v13 = vld [vmem:[%s3650_s1 + $0x5a0] sm:$0xff]   ;;  %v2950_v14 = vld [vmem:[%s3650_s1 + $0x558] sm:$0xff]  }
  0x7e   :  { %2628 = vmatprep.subr.bf16.mxu1 %v2891_v15  ;;  %v2951_v15 = vld [vmem:[%s3650_s1 + $0x5d8] sm:$0xff]  }
  0x80   :  { %2607 = vmatpush3.bf16.msra.mxu0 %v2892_v16  ;;  %v2952_v16 = vld [vmem:[%s3650_s1 + $0x518] sm:$0xff]  }
  0x81   :  { %2629 = vmatpush3.bf16.msra.mxu1 %v2893_v17  ;;  %2636 = vmatprep.subr.bf16.mxu0 %v2898_v23  ;;  %v2953_v17 = vld [vmem:[%s3650_s1 + $0x598] sm:$0xff]   ;;  %v2959_v23 = vld [vmem:[%s3650_s1 + $0x5c8] sm:$0xff]  }
  0x82   :  { %2658 = vmatprep.subr.bf16.mxu1 %v2899_v25  ;;  %v2961_v25 = vld [vmem:[%s3650_s1 + $0x588] sm:$0xff]  }
  0x83   :  { %1930 = vmatmul.mubr.bf16.vlgmr.msra.gmra.mxu0 %v2255_v20  ;;  %v2956_v20 = vld [vmem:[%s3650_s1 + $0x510] sm:$0xff]  }
  0x84   :  { %1970 = vmatmul.mubr.bf16.vlgmr.msra.gmra.mxu1 %v2257_v22  ;;  %2637 = vmatpush3.bf16.msra.mxu0 %v2900_v26  ;;  %v2958_v22 = vld [vmem:[%s3650_s1 + $0x548] sm:$0xff]   ;;  %v2962_v26 = vld [vmem:[%s3650_s1 + $0x540] sm:$0xff]  }
  0x85   :  { %2659 = vmatpush3.bf16.msra.mxu1 %v2901_v27  ;;  %2638 = vmatprep.subr.bf16.mxu0 %v2902_v28  ;;  %v2963_v27 = vld [vmem:[%s3650_s1 + $0x5c0] sm:$0xff]  }
  0x86   :  { %2660 = vmatprep.subr.bf16.mxu1 %v2903_v29  ;;  %2009 = vmatprep.mubr.bf16.mxu0 %v2260_v58  ;;  %v2964_v28 = vld [vmem:[%s3650_s1 + $0x500] sm:$0xff]  }
  0x87   :  { %2049 = vmatprep.mubr.bf16.mxu1 %v2262_v61  ;;  %v2965_v29 = vld [vmem:[%s3650_s1 + $0x580] sm:$0xff]  }
  0x88   :  { %2639 = vmatpush3.bf16.msra.mxu0 %v2904_v30  ;;  %v28_v30 = vld [vmem:[%s3651_s0 + $0x50] sm:$0xff] }
  0x89   :  { %2661 = vmatpush3.bf16.msra.mxu1 %v2905_v31  ;;  %2640 = vmatprep.subr.bf16.mxu0 %v2906_v32  ;;  %v29_v31 = vld [vmem:[%s3651_s0 + $0x58] sm:$0xff]  ;;  %v2263_v32 = vcombine.low %v28_v30, %v28_v30 }
  0x8a   :  { %2662 = vmatprep.subr.bf16.mxu1 %v2907_v33  ;;  %v2264_v33 = vcombine.high %v28_v30, %v28_v30 }
  0x8c   :  { %2641 = vmatpush3.bf16.msra.mxu0 %v2908_v34  ;;  %v2265_v34 = vcombine.low %v29_v31, %v29_v31 }
  0x8d   :  { %2663 = vmatpush3.bf16.msra.mxu1 %v2909_v35  ;;  %2642 = vmatprep.subr.bf16.mxu0 %v2910_v36  ;;  %v2266_v35 = vcombine.high %v29_v31, %v29_v31 }
  0x8e   :  { %2664 = vmatprep.subr.bf16.mxu1 %v2911_v37 }
  0x90   :  { %2643 = vmatpush3.bf16.msra.mxu0 %v2912_v38  ;;  %v2242_v38 = vld [vmem:[%s3652_s2] ss:$0 sm:$0xff] }
  0x91   :  { %2665 = vmatpush3.bf16.msra.mxu1 %v2913_v39  ;;  %2644 = vmatprep.subr.bf16.mxu0 %v2914_v40 }
  0x92   :  { %2666 = vmatprep.subr.bf16.mxu1 %v2915_v41 }
  0x94   :  { %2645 = vmatpush3.bf16.msra.mxu0 %v2916_v42 }
  0x95   :  { %2667 = vmatpush3.bf16.msra.mxu1 %v2917_v43  ;;  %2646 = vmatprep.subr.bf16.mxu0 %v2918_v44 }
  0x96   :  { %2668 = vmatprep.subr.bf16.mxu1 %v2919_v45 }
  0x98   :  { %2647 = vmatpush3.bf16.msra.mxu0 %v2920_v46 }
  0x99   :  { %2669 = vmatpush3.bf16.msra.mxu1 %v2921_v47  ;;  %2648 = vmatprep.subr.bf16.mxu0 %v2922_v48 }
  0x9a   :  { %2670 = vmatprep.subr.bf16.mxu1 %v2923_v49 }
  0x9c   :  { %2649 = vmatpush3.bf16.msra.mxu0 %v2924_v50 }
  0x9d   :  { %2671 = vmatpush3.bf16.msra.mxu1 %v2925_v51  ;;  %2650 = vmatprep.subr.bf16.mxu0 %v2926_v52 }
  0x9e   :  { %2672 = vmatprep.subr.bf16.mxu1 %v2927_v53 }
  0xa0   :  { %2651 = vmatpush3.bf16.msra.mxu0 %v2928_v54 }
  0xa1   :  { %2673 = vmatpush3.bf16.msra.mxu1 %v2929_v55  ;;  %2680 = vmatprep.subr.bf16.mxu0 %v2934_v62 }
  0xa2   :  { %2702 = vmatprep.subr.bf16.mxu1 %v2935_v63 }
  0xa3   :  { %2010 = vmatmul.mubr.bf16.vlgmr.msra.gmra.mxu0 %v2259_v57 }
  0xa4   :  { %2050 = vmatmul.mubr.bf16.vlgmr.msra.gmra.mxu1 %v2261_v60  ;;  %2681 = vmatpush3.bf16.msra.mxu0 %v2936_v0 }
  0xa5   :  { %2703 = vmatpush3.bf16.msra.mxu1 %v2937_v1  ;;  %2682 = vmatprep.subr.bf16.mxu0 %v2938_v2 }
  0xa6   :  { %2704 = vmatprep.subr.bf16.mxu1 %v2939_v3  ;;  %2089 = vmatprep.mubr.bf16.mxu0 %v2264_v33 }
  0xa7   :  { %2129 = vmatprep.mubr.bf16.mxu1 %v2266_v35 }
  0xa8   :  { %2683 = vmatpush3.bf16.msra.mxu0 %v2940_v4 }
  0xa9   :  { %2705 = vmatpush3.bf16.msra.mxu1 %v2941_v5  ;;  %2684 = vmatprep.subr.bf16.mxu0 %v2942_v6 }
  0xaa   :  { %2706 = vmatprep.subr.bf16.mxu1 %v2943_v7 }
  0xac   :  { %2685 = vmatpush3.bf16.msra.mxu0 %v2944_v8 }
  0xad   :  { %2707 = vmatpush3.bf16.msra.mxu1 %v2945_v9  ;;  %2686 = vmatprep.subr.bf16.mxu0 %v2946_v10 }
  0xae   :  { %2708 = vmatprep.subr.bf16.mxu1 %v2947_v11 }
  0xb0   :  { %2687 = vmatpush3.bf16.msra.mxu0 %v2948_v12 }
  0xb1   :  { %2709 = vmatpush3.bf16.msra.mxu1 %v2949_v13  ;;  %2688 = vmatprep.subr.bf16.mxu0 %v2950_v14 }
  0xb2   :  { %2710 = vmatprep.subr.bf16.mxu1 %v2951_v15 }
  0xb4   :  { %2689 = vmatpush3.bf16.msra.mxu0 %v2952_v16 }
  0xb5   :  { %2711 = vmatpush3.bf16.msra.mxu1 %v2953_v17  ;;  %2690 = vmatprep.subr.bf16.mxu0 %v2954_v18 }
  0xb6   :  { %2712 = vmatprep.subr.bf16.mxu1 %v2955_v19 }
  0xb8   :  { %2691 = vmatpush3.bf16.msra.mxu0 %v2956_v20 }
  0xb9   :  { %2713 = vmatpush3.bf16.msra.mxu1 %v2957_v21  ;;  %2692 = vmatprep.subr.bf16.mxu0 %v2958_v22 }
  0xba   :  { %2714 = vmatprep.subr.bf16.mxu1 %v2959_v23 }
  0xbc   :  { %2693 = vmatpush3.bf16.msra.mxu0 %v2960_v24 }
  0xbd   :  { %2715 = vmatpush3.bf16.msra.mxu1 %v2961_v25  ;;  %2694 = vmatprep.subr.bf16.mxu0 %v2962_v26 }
  0xbe   :  { %2716 = vmatprep.subr.bf16.mxu1 %v2963_v27 }
  0xc0   :  { %2695 = vmatpush3.bf16.msra.mxu0 %v2964_v28 }
  0xc1   :  { %2717 = vmatpush3.bf16.msra.mxu1 %v2965_v29 }
  0xc3   :  { %2090 = vmatmul.mubr.bf16.vlgmr.msra.gmra.mxu0 %v2263_v32 }
  0xc4   :  { %2130 = vmatmul.mubr.bf16.vlgmr.msra.gmra.mxu1 %v2265_v34 }
  0xe3   :  { %v2476_v36 = vpop.f32.mrf.mxu0 }
  0xe4   :  { %v2498_v37 = vpop.f32.mrf.mxu1 }
  0xe5   :  { %v2477_v39 = vpop.f32.mrf.mxu0 }
  0xe6   :  { %v2499_v40 = vpop.f32.mrf.mxu1  ;;  %v2478_v41 = vadd.f32 %v2477_v39, %v2476_v36 }
  0xe7   :  { %v2500_v42 = vadd.f32 %v2499_v40, %v2498_v37  ;;  %v2479_v43 = vpop.f32.mrf.mxu0 }
  0xe8   :  { %v2501_v44 = vpop.f32.mrf.mxu1  ;;  %v1692_v45 = vadd.f32 %v2478_v41, %v2242_v38 }
  0xe9   :  { %v2480_v46 = vpop.f32.mrf.mxu0 }
  0xea   :  { %v2502_v47 = vpop.f32.mrf.mxu1  ;;  %v1732_v48 = vadd.f32 %v2500_v42, %v1692_v45 }
  0xeb   :  { %v2976_v47 = vmov 0.0  }
  0xec   :  { %2733 = vmatprep.subr.mxu0 %v2976_v47  ;;  %2749 = vmatprep.mubr.msk.f32.mxu0 %vm2977_vm1, %v2976_v47 }
 0x103   :  { %v2520_v49 = vpop.f32.mrf.mxu0 }
 0x104   :  { %v2542_v50 = vpop.f32.mrf.mxu1 }
 0x105   :  { %v2521_v51 = vpop.f32.mrf.mxu0 }
 0x106   :  { %v2543_v52 = vpop.f32.mrf.mxu1  ;;  %v2522_v53 = vadd.f32 %v2521_v51, %v2520_v49  ;;  %v2150_v49 = vld [vmem:[%s3653_s3 + $0x30] sm:$0xff]  ;;  %v2148_v51 = vld [vmem:[%s3653_s3 + $0x20] sm:$0xff] }
 0x107   :  { %v2544_v54 = vadd.f32 %v2543_v52, %v2542_v50  ;;  %v2523_v55 = vpop.f32.mrf.mxu0  ;;  %v2149_v50 = vld [vmem:[%s3653_s3 + $0x28] sm:$0xff]  ;;  %v2147_v52 = vld [vmem:[%s3653_s3 + $0x18] sm:$0xff] }
 0x108   :  { %v2545_v56 = vpop.f32.mrf.mxu1  ;;  %v1772_v57 = vadd.f32 %v2522_v53, %v1732_v48  ;;  %v2151_v48 = vld [vmem:[%s3653_s3 + $0x38] sm:$0xff]  ;;  %v2146_v53 = vld [vmem:[%s3653_s3 + $0x10] sm:$0xff]  ;;  %v2144_v55 = vld [vmem:[%s3653_s3] sm:$0xff] }
 0x109   :  { %v2524_v58 = vpop.f32.mrf.mxu0  ;;  %2734 = vmatpush3.msra.mxu0 %v2151_v48 }
 0x10a   :  { %v2546_v59 = vpop.f32.mrf.mxu1  ;;  %v1812_v60 = vadd.f32 %v2544_v54, %v1772_v57  ;;  %2735 = vmatprep.subr.mxu0 %v2976_v47  ;;  %v2145_v54 = vld [vmem:[%s3653_s3 + $0x8] sm:$0xff] }
 0x10b   :  { %2736 = vmatpush3.msra.mxu0 %v2150_v49 }
 0x10c   :  { %2737 = vmatprep.subr.mxu0 %v2976_v47 }
 0x10d   :  { %2738 = vmatpush3.msra.mxu0 %v2149_v50 }
 0x10e   :  { %2739 = vmatprep.subr.mxu0 %v2976_v47 }
 0x10f   :  { %2740 = vmatpush3.msra.mxu0 %v2148_v51 }
 0x110   :  { %2741 = vmatprep.subr.mxu0 %v2976_v47 }
 0x111   :  { %2742 = vmatpush3.msra.mxu0 %v2147_v52 }
 0x112   :  { %2743 = vmatprep.subr.mxu0 %v2976_v47 }
 0x113   :  { %2744 = vmatpush3.msra.mxu0 %v2146_v53 }
 0x114   :  { %2745 = vmatprep.subr.mxu0 %v2976_v47 }
 0x115   :  { %2746 = vmatpush3.msra.mxu0 %v2145_v54 }
 0x116   :  { %2747 = vmatprep.subr.mxu0 %v2976_v47 }
 0x117   :  { %2748 = vmatpush3.msra.mxu0 %v2144_v55 }
 0x123   :  { %v2564_v61 = vpop.f32.mrf.mxu0 }
 0x124   :  { %v2586_v62 = vpop.f32.mrf.mxu1 }
 0x125   :  { %v2565_v63 = vpop.f32.mrf.mxu0 }
 0x126   :  { %v2566_v0 = vadd.f32 %v2565_v63, %v2564_v61  ;;  %v2587_v1 = vpop.f32.mrf.mxu1 }
 0x127   :  { %v2588_v2 = vadd.f32 %v2587_v1, %v2586_v62  ;;  %v2567_v3 = vpop.f32.mrf.mxu0 }
 0x128   :  { %v1852_v4 = vadd.f32 %v2566_v0, %v1812_v60  ;;  %v2589_v5 = vpop.f32.mrf.mxu1 }
 0x129   :  { %v2568_v6 = vpop.f32.mrf.mxu0 }
 0x12a   :  { %v1892_v7 = vadd.f32 %v2588_v2, %v1852_v4  ;;  %v2590_v8 = vpop.f32.mrf.mxu1 }
 0x143   :  { %v2608_v9 = vpop.f32.mrf.mxu0 }
 0x144   :  { %v2630_v10 = vpop.f32.mrf.mxu1 }
 0x145   :  { %v2609_v11 = vpop.f32.mrf.mxu0 }
 0x146   :  { %v2631_v12 = vpop.f32.mrf.mxu1  ;;  %v2610_v25 = vadd.f32 %v2609_v11, %v2608_v9 }
 0x147   :  { %v2611_v13 = vpop.f32.mrf.mxu0  ;;  %v2632_v27 = vadd.f32 %v2631_v12, %v2630_v10 }
 0x148   :  { %v2633_v14 = vpop.f32.mrf.mxu1  ;;  %v1932_v26 = vadd.f32 %v2610_v25, %v1892_v7 }
 0x149   :  { %v2612_v15 = vpop.f32.mrf.mxu0 }
 0x14a   :  { %v2634_v16 = vpop.f32.mrf.mxu1  ;;  %v1972_v29 = vadd.f32 %v2632_v27, %v1932_v26 }
 0x163   :  { %v2652_v17 = vpop.f32.mrf.mxu0 }
 0x164   :  { %v2674_v18 = vpop.f32.mrf.mxu1 }
 0x165   :  { %v2653_v19 = vpop.f32.mrf.mxu0 }
 0x166   :  { %v2675_v20 = vpop.f32.mrf.mxu1  ;;  %v2654_v28 = vadd.f32 %v2653_v19, %v2652_v17 }
 0x167   :  { %v2655_v21 = vpop.f32.mrf.mxu0  ;;  %v2676_v31 = vadd.f32 %v2675_v20, %v2674_v18 }
 0x168   :  { %v2677_v22 = vpop.f32.mrf.mxu1  ;;  %v2012_v30 = vadd.f32 %v2654_v28, %v1972_v29 }
 0x169   :  { %v2656_v23 = vpop.f32.mrf.mxu0 }
 0x16a   :  { %v2678_v24 = vpop.f32.mrf.mxu1  ;;  %v2052_v35 = vadd.f32 %v2676_v31, %v2012_v30 }
 0x183   :  { %v2696_v32 = vpop.f32.mrf.mxu0 }
 0x184   :  { %v2718_v33 = vpop.f32.mrf.mxu1 }
 0x185   :  { %v2697_v34 = vpop.f32.mrf.mxu0 }
 0x186   :  { %v2698_v36 = vadd.f32 %v2697_v34, %v2696_v32  ;;  %v2719_v37 = vpop.f32.mrf.mxu1 }
 0x187   :  { %v2699_v38 = vpop.f32.mrf.mxu0  ;;  %v2720_v40 = vadd.f32 %v2719_v37, %v2718_v33 }
 0x188   :  { %v2092_v39 = vadd.f32 %v2698_v36, %v2052_v35  ;;  %v2721_v41 = vpop.f32.mrf.mxu1 }
 0x189   :  { %v2700_v42 = vpop.f32.mrf.mxu0 }
 0x18a   :  { %v2132_v43 = vadd.f32 %v2720_v40, %v2092_v39  ;;  %v2722_v44 = vpop.f32.mrf.mxu1 }
 0x18c   :  { %v2137_v45 = vmul.f32 %v2132_v43, %v2132_v43 }
 0x18e   :  { %v2139_v46 = vsel %vm2138_vm0, %v2137_v45, 0.0 }
 0x18f   :  { %2140 = vadd.xlane.f32.xlu0 %v2139_v46 }
 0x218   :  { %v2141_v56 = vpop.xlane.xlu0 %2140 }
 0x219   :  { %2970 = vrsqrt.f32 %v2141_v56 }
 0x226   :  { %v2971_v57 = vpop.eup %2970 }
 0x227   :  { %v2143_v58 = vmul.f32 %v2971_v57, %v2132_v43 }
 0x229   :  { %2750 = vmatmul.mubr.msk.f32.vlgmr.msra.gmra.mxu0 %vm2138_vm0, %v2143_v58 }
 0x2e9   :  { %v2221_v59 = vpop.f32.mrf.mxu0 }
 0x2ea   :  { %v2226_v60 = vsel %vm2225_vm2, %v2221_v59, -inf }
 0x2eb   :  { %2227 = vmax.xlane.f32.xlu0 %v2226_v60  ;;  %v2751_v61 = vpop.f32.mrf.mxu0 }
 0x374   :  { %v2228_v62 = vpop.xlane.xlu0 %2227 }
 0x375   :  { %v2229_v63 = vsub.f32 %v2221_v59, %v2228_v62 }
 0x377   :  { %v2230_v0 = vmul.f32 1.442695, %v2229_v63 }
 0x379   :  { %2972 = vpow2.f32 %v2230_v0 }
 0x386   :  { %v2973_v1 = vpop.eup %2972 }
 0x387   :  { %v2232_v2 = vsel %vm2225_vm2, %v2973_v1, 0.0 }
 0x388   :  { %2233 = vadd.xlane.f32.xlu1 %v2232_v2 }
 0x411   :  { %v2234_v3 = vpop.xlane.xlu1 %2233 }
 0x412   :  { %2974 = vrcp.f32 %v2234_v3 }
 0x41f   :  { %v2975_v4 = vpop.eup %2974 }
 0x420   :  { %v2236_v5 = vmul.f32 %v2975_v4, %v2973_v1 }
 0x422   :  { %2237 = vst.msk [vmem:[%s3654_s4] sm:$0xff] %vm2225_vm2, %v2236_v5 }

</bundles_post_ra>
